<compile_context>
chip_gen: v7x
topology: tpu7x:2x2x1
jax: 0.10.0
libtpu: 0.0.40
codegen_flags: <defaults>
</compile_context>

<pallas_src>
import jax
import jax.numpy as jnp
from jax.experimental import pallas as pl
from jax.experimental.pallas import tpu as pltpu

ALPHA = 8      # temporal stride
KT = 5         # temporal kernel size
PAD = 2        # temporal padding
BN_EPS = 1e-5


def fuse_kernel(xs_ref, xf_ref, w_ref, shift_ref, o_ref):
    # xs_ref:    (C_slow, T_out, HW_blk)       slow pathway pass-through
    # xf_ref:    (C, T_out, ALPHA, HW_blk)     fast pathway, period-major view
    # w_ref:     (C2, KT*C)                    conv weights with BN scale folded in
    # shift_ref: (C2, 1)                       folded BN shift
    # o_ref:     (C_slow + C2, T_out, HW_blk)  concatenated output
    c_slow, t_out, hw_blk = xs_ref.shape
    c = xf_ref.shape[0]

    # channel-concat band: pure VMEM copy (no extra HBM pass for the concat)
    o_ref[0:c_slow, :, :] = xs_ref[...].astype(o_ref.dtype)

    shift = shift_ref[...]                                   # (C2, 1) f32
    zero_tap = jnp.zeros((c, hw_blk), xf_ref.dtype)
    for t in range(t_out):                                   # static unroll, T_out is small
        taps = []
        for k in range(KT):
            f = t * ALPHA + k - PAD                          # source frame (python int)
            if f < 0:                                        # conv zero padding (t==0, k<PAD)
                taps.append(zero_tap)
            else:
                st, sa = divmod(f, ALPHA)                    # period index / offset-in-period
                taps.append(xf_ref[:, st, sa, :])            # (C, HW_blk) static slice
        x_t = jnp.concatenate(taps, axis=0)                  # (KT*C, HW_blk)
        acc = jnp.dot(w_ref[...], x_t, preferred_element_type=jnp.float32)
        y = jnp.maximum(acc + shift, 0.0)                    # fused BN shift + ReLU
        o_ref[c_slow:, t, :] = y.astype(o_ref.dtype)


def _pick_hw_blk(hw, n_batch, bytes_per_hw,
                 budget=20 * 1024 * 1024, min_blk_bytes=64 * 1024):
    """Largest legal HW block: a multiple of 128 dividing HW, or the full extent."""
    if hw % 128 != 0:
        return hw                       # full last-dim extent is always legal
    blk = hw
    # shrink until the per-step block set fits the VMEM budget
    while blk % 256 == 0 and bytes_per_hw * blk > budget:
        blk //= 2
    # if the grid would be tiny, split further (megacore sharding + DMA/compute
    # overlap) while keeping blocks lane-dense and big enough to amortize the
    # ~0.35us per-step pipeline overhead
    while (n_batch * (hw // blk) < 4 and blk % 256 == 0
           and bytes_per_hw * (blk // 2) >= min_blk_bytes):
        blk //= 2
    return blk


def fuse_forward(x_slow, x_fast, conv_w, gamma, beta, run_mean, run_var):
    N, C, T_fast, H, W = x_fast.shape
    Ns, C_slow, T_slow, Hs, Ws = x_slow.shape
    C2 = 2 * C
    HW = H * W
    T_out = (T_fast + 2 * PAD - KT) // ALPHA + 1
    assert (Ns, Hs, Ws) == (N, H, W) and T_slow == T_out, "SlowFast shape invariant"
    out_dtype = x_slow.dtype
    itemsize = jnp.dtype(x_fast.dtype).itemsize

    # period-major view of x_fast: a pure reshape when T_fast % ALPHA == 0 (the
    # SlowFast invariant); otherwise a tiny tail pad whose frames land exactly on
    # the conv's zero-padded region, so numerics are unchanged.
    t_pad = T_out * ALPHA
    xf = x_fast if t_pad == T_fast else jnp.pad(
        x_fast, ((0, 0), (0, 0), (0, t_pad - T_fast), (0, 0), (0, 0)))
    xf = xf.reshape(N, C, T_out, ALPHA, HW)
    xs = x_slow.reshape(N, C_slow, T_out, HW)

    # fold BN (inference-mode running stats) into the conv weights / shift
    scale = gamma / jnp.sqrt(run_var + BN_EPS)                       # (C2,)
    shift = (beta - run_mean * scale).reshape(C2, 1).astype(jnp.float32)
    # conv_w (C2, C, KT, 1, 1) -> (C2, KT, C) -> (C2, KT*C); column order k*C + c
    # matches the in-kernel tap concatenation order.
    w2d = jnp.transpose(conv_w[:, :, :, 0, 0], (0, 2, 1))
    w2d = (w2d * scale[:, None, None]).reshape(C2, KT * C).astype(x_fast.dtype)

    # ---- tiling: HW only; T_out / ALPHA / channels stay full extents ----------
    bytes_per_hw = (C * T_out * ALPHA + C_slow * T_out
                    + (C_slow + C2) * T_out) * itemsize
    HW_blk = _pick_hw_blk(HW, N, bytes_per_hw)
    n_hw = HW // HW_blk
    per_step = bytes_per_hw * HW_blk
    # double-buffered blocks + headroom; >= 32 MiB (raise over v5e default),
    # <= 48 MiB (safe under v7x's 64 MiB physical VMEM)
    vmem_limit = int(min(max(2 * per_step + (4 << 20), 32 << 20), 48 << 20))

    out = pl.pallas_call(
        fuse_kernel,
        out_shape=jax.ShapeDtypeStruct((N, C_slow + C2, T_out, HW), out_dtype),
        grid_spec=pltpu.PrefetchScalarGridSpec(
            num_scalar_prefetch=0,
            grid=(N, n_hw),
            in_specs=[
                pl.BlockSpec((None, C_slow, T_out, HW_blk),
                             lambda n, j: (n, 0, 0, j)),
                pl.BlockSpec((None, C, T_out, ALPHA, HW_blk),
                             lambda n, j: (n, 0, 0, 0, j)),
                pl.BlockSpec((C2, KT * C), lambda n, j: (0, 0)),
                pl.BlockSpec((C2, 1), lambda n, j: (0, 0)),
            ],
            out_specs=pl.BlockSpec((None, C_slow + C2, T_out, HW_blk),
                                   lambda n, j: (n, 0, 0, j)),
        ),
        compiler_params=pltpu.CompilerParams(
            dimension_semantics=("parallel", "parallel"),
            vmem_limit_bytes=vmem_limit),
    )(xs, xf, w2d, shift)

    x_slow_out = out.reshape(N, C_slow + C2, T_out, H, W)   # pure reshape
    return [x_slow_out, x_fast]


def fuse_reference(x_slow, x_fast, conv_w, gamma, beta, run_mean, run_var):
    # pure-JAX reference of the PyTorch forward (inference-mode BN)
    conv = jax.lax.conv_general_dilated(
        x_fast, conv_w,
        window_strides=(ALPHA, 1, 1),
        padding=((PAD, PAD), (0, 0), (0, 0)),
        dimension_numbers=('NCDHW', 'OIDHW', 'NCDHW'))
    bcast = lambda v: v.reshape(1, -1, 1, 1, 1)
    y = (conv - bcast(run_mean)) / jnp.sqrt(bcast(run_var) + BN_EPS)
    y = y * bcast(gamma) + bcast(beta)
    y = jnp.maximum(y, 0.0)
    return [jnp.concatenate([x_slow, y], axis=1), x_fast]


if __name__ == "__main__":
    # small shapes: dim_in=4, batch=2, T_slow=4 -> T_fast = alpha*T_slow = 32, H=W=16
    N, C, T_slow, H, W = 2, 4, 4, 16, 16
    T_fast = ALPHA * T_slow
    C_slow = 16  # slow-pathway channel count (just concatenated)

    key = jax.random.PRNGKey(0)
    k1, k2, k3, k4, k5, k6, k7 = jax.random.split(key, 7)

    x_slow = jax.random.normal(k1, (N, C_slow, T_slow, H, W), dtype=jnp.float32)
    x_fast = jax.random.normal(k2, (N, C, T_fast, H, W), dtype=jnp.float32)

    # deterministic "parameters" (shapes match nn.Conv3d / nn.BatchNorm3d in __init__)
    conv_w = 0.1 * jax.random.normal(k3, (2 * C, C, KT, 1, 1), dtype=jnp.float32)
    gamma = 1.0 + 0.1 * jax.random.normal(k4, (2 * C,), dtype=jnp.float32)
    beta = 0.1 * jax.random.normal(k5, (2 * C,), dtype=jnp.float32)
    run_mean = 0.1 * jax.random.normal(k6, (2 * C,), dtype=jnp.float32)
    run_var = 0.5 + jnp.abs(jax.random.normal(k7, (2 * C,), dtype=jnp.float32))

    fuse_jit = jax.jit(fuse_forward)
    out_slow, out_fast = fuse_jit(x_slow, x_fast, conv_w, gamma, beta,
                                  run_mean, run_var)
    jax.block_until_ready(out_slow)
    jax.block_until_ready(out_fast)

    ref_slow, ref_fast = fuse_reference(x_slow, x_fast, conv_w, gamma, beta,
                                        run_mean, run_var)
    assert out_slow.shape == (N, C_slow + 2 * C, T_slow, H, W)
    assert jnp.allclose(out_slow, ref_slow, atol=1e-4, rtol=1e-4)
    assert jnp.array_equal(out_fast, x_fast)

    print("KERNEL_OK")
</pallas_src>

<mosaic_0001>
module attributes {stable_mosaic.version = 11 : i64} {
  func.func @fuse_kernel(%arg0: i32, %arg1: i32, %arg2: memref<1x16x4x128xf32, #tpu.memory_space<vmem>>, %arg3: memref<1x4x4x8x128xf32, #tpu.memory_space<vmem>>, %arg4: memref<8x20xf32, #tpu.memory_space<vmem>>, %arg5: memref<8x1xf32, #tpu.memory_space<vmem>>, %arg6: memref<1x24x4x128xf32, #tpu.memory_space<vmem>>) attributes {dimension_semantics = [#tpu.dimension_semantics<parallel>, #tpu.dimension_semantics<parallel>], iteration_bounds = array<i64: 2, 2>, scalar_prefetch = 0 : i64, scratch_operands = 0 : i64, tpu.core_type = #tpu.core_type<tc>, window_params = [{transform_indices = @transform_0, window_bounds = array<i64: 1, 16, 4, 128>}, {transform_indices = @transform_1, window_bounds = array<i64: 1, 4, 4, 8, 128>}, {pipeline_mode = #tpu.pipeline_mode<synchronous>, transform_indices = @transform_2, window_bounds = array<i64: 8, 20>}, {pipeline_mode = #tpu.pipeline_mode<synchronous>, transform_indices = @transform_3, window_bounds = array<i64: 8, 1>}, {transform_indices = @transform_4, window_bounds = array<i64: 1, 24, 4, 128>}]} {
    %c0 = arith.constant 0 : index
    %c0_0 = arith.constant 0 : index
    %c0_1 = arith.constant 0 : index
    %c0_2 = arith.constant 0 : index
    %0 = vector.load %arg2[%c0, %c0_0, %c0_1, %c0_2] : memref<1x16x4x128xf32, #tpu.memory_space<vmem>>, vector<1x16x4x128xf32>
    %1 = vector.shape_cast %0 : vector<1x16x4x128xf32> to vector<16x4x128xf32>
    %c0_3 = arith.constant 0 : index
    %c0_4 = arith.constant 0 : index
    %c0_5 = arith.constant 0 : index
    %c0_6 = arith.constant 0 : index
    %2 = vector.load %arg6[%c0_3, %c0_4, %c0_5, %c0_6] : memref<1x24x4x128xf32, #tpu.memory_space<vmem>>, vector<1x16x4x128xf32>
    %3 = vector.shape_cast %2 : vector<1x16x4x128xf32> to vector<16x4x128xf32>
    %4 = vector.shape_cast %1 : vector<16x4x128xf32> to vector<1x16x4x128xf32>
    tpu.vector_store %arg6[%c0_3, %c0_4, %c0_5, %c0_6], %4 {strides = array<i32>} : memref<1x24x4x128xf32, #tpu.memory_space<vmem>>, vector<1x16x4x128xf32>,
    %c0_7 = arith.constant 0 : index
    %c0_8 = arith.constant 0 : index
    %5 = vector.load %arg5[%c0_7, %c0_8] : memref<8x1xf32, #tpu.memory_space<vmem>>, vector<8x1xf32>
    %cst = arith.constant 0.000000e+00 : f32
    %6 = vector.broadcast %cst : f32 to vector<4x128xf32>
    %c0_9 = arith.constant 0 : index
    %c0_10 = arith.constant 0 : index
    %c0_11 = arith.constant 0 : index
    %c0_12 = arith.constant 0 : index
    %c0_13 = arith.constant 0 : index
    %7 = vector.load %arg3[%c0_9, %c0_10, %c0_11, %c0_12, %c0_13] : memref<1x4x4x8x128xf32, #tpu.memory_space<vmem>>, vector<1x4x1x1x128xf32>
    %8 = vector.shape_cast %7 : vector<1x4x1x1x128xf32> to vector<4x128xf32>
    %c0_14 = arith.constant 0 : index
    %c0_15 = arith.constant 0 : index
    %c0_16 = arith.constant 0 : index
    %c1 = arith.constant 1 : index
    %c0_17 = arith.constant 0 : index
    %9 = vector.load %arg3[%c0_14, %c0_15, %c0_16, %c1, %c0_17] : memref<1x4x4x8x128xf32, #tpu.memory_space<vmem>>, vector<1x4x1x1x128xf32>
    %10 = vector.shape_cast %9 : vector<1x4x1x1x128xf32> to vector<4x128xf32>
    %c0_18 = arith.constant 0 : index
    %c0_19 = arith.constant 0 : index
    %c0_20 = arith.constant 0 : index
    %c2 = arith.constant 2 : index
    %c0_21 = arith.constant 0 : index
    %11 = vector.load %arg3[%c0_18, %c0_19, %c0_20, %c2, %c0_21] : memref<1x4x4x8x128xf32, #tpu.memory_space<vmem>>, vector<1x4x1x1x128xf32>
    %12 = vector.shape_cast %11 : vector<1x4x1x1x128xf32> to vector<4x128xf32>
    %13 = tpu.concatenate %6, %6, %8, %10, %12 in 0 : vector<4x128xf32>, vector<4x128xf32>, vector<4x128xf32>, vector<4x128xf32>, vector<4x128xf32> -> vector<20x128xf32>
    %c0_22 = arith.constant 0 : index
    %c0_23 = arith.constant 0 : index
    %14 = vector.load %arg4[%c0_22, %c0_23] : memref<8x20xf32, #tpu.memory_space<vmem>>, vector<8x20xf32>
    %cst_24 = arith.constant dense<0.000000e+00> : vector<8x128xf32>
    %15 = tpu.matmul %14, %13, %cst_24 {dimension_numbers = #tpu.dot_dimension_numbers<[1], [0], [0], [1], [0, 0, 1, 1], [], []>} : vector<8x20xf32>, vector<20x128xf32>, vector<8x128xf32> -> vector<8x128xf32>
    %16 = vector.broadcast %5 : vector<8x1xf32> to vector<8x128xf32>
    %17 = arith.addf %15, %16 : vector<8x128xf32>
    %cst_25 = arith.constant 0.000000e+00 : f32
    %18 = vector.broadcast %cst_25 : f32 to vector<8x128xf32>
    %19 = arith.maximumf %17, %18 : vector<8x128xf32>
    %c0_26 = arith.constant 0 : index
    %c16 = arith.constant 16 : index
    %c0_27 = arith.constant 0 : index
    %c0_28 = arith.constant 0 : index
    %20 = vector.load %arg6[%c0_26, %c16, %c0_27, %c0_28] : memref<1x24x4x128xf32, #tpu.memory_space<vmem>>, vector<1x8x1x128xf32>
    %21 = vector.shape_cast %20 : vector<1x8x1x128xf32> to vector<8x128xf32>
    %22 = vector.shape_cast %19 : vector<8x128xf32> to vector<1x8x1x128xf32>
    tpu.vector_store %arg6[%c0_26, %c16, %c0_27, %c0_28], %22 {strides = array<i32>} : memref<1x24x4x128xf32, #tpu.memory_space<vmem>>, vector<1x8x1x128xf32>,
    %c0_29 = arith.constant 0 : index
    %c0_30 = arith.constant 0 : index
    %c0_31 = arith.constant 0 : index
    %c6 = arith.constant 6 : index
    %c0_32 = arith.constant 0 : index
    %23 = vector.load %arg3[%c0_29, %c0_30, %c0_31, %c6, %c0_32] : memref<1x4x4x8x128xf32, #tpu.memory_space<vmem>>, vector<1x4x1x1x128xf32>
    %24 = vector.shape_cast %23 : vector<1x4x1x1x128xf32> to vector<4x128xf32>
    %c0_33 = arith.constant 0 : index
    %c0_34 = arith.constant 0 : index
    %c0_35 = arith.constant 0 : index
    %c7 = arith.constant 7 : index
    %c0_36 = arith.constant 0 : index
    %25 = vector.load %arg3[%c0_33, %c0_34, %c0_35, %c7, %c0_36] : memref<1x4x4x8x128xf32, #tpu.memory_space<vmem>>, vector<1x4x1x1x128xf32>
    %26 = vector.shape_cast %25 : vector<1x4x1x1x128xf32> to vector<4x128xf32>
    %c0_37 = arith.constant 0 : index
    %c0_38 = arith.constant 0 : index
    %c1_39 = arith.constant 1 : index
    %c0_40 = arith.constant 0 : index
    %c0_41 = arith.constant 0 : index
    %27 = vector.load %arg3[%c0_37, %c0_38, %c1_39, %c0_40, %c0_41] : memref<1x4x4x8x128xf32, #tpu.memory_space<vmem>>, vector<1x4x1x1x128xf32>
    %28 = vector.shape_cast %27 : vector<1x4x1x1x128xf32> to vector<4x128xf32>
    %c0_42 = arith.constant 0 : index
    %c0_43 = arith.constant 0 : index
    %c1_44 = arith.constant 1 : index
    %c1_45 = arith.constant 1 : index
    %c0_46 = arith.constant 0 : index
    %29 = vector.load %arg3[%c0_42, %c0_43, %c1_44, %c1_45, %c0_46] : memref<1x4x4x8x128xf32, #tpu.memory_space<vmem>>, vector<1x4x1x1x128xf32>
    %30 = vector.shape_cast %29 : vector<1x4x1x1x128xf32> to vector<4x128xf32>
    %c0_47 = arith.constant 0 : index
    %c0_48 = arith.constant 0 : index
    %c1_49 = arith.constant 1 : index
    %c2_50 = arith.constant 2 : index
    %c0_51 = arith.constant 0 : index
    %31 = vector.load %arg3[%c0_47, %c0_48, %c1_49, %c2_50, %c0_51] : memref<1x4x4x8x128xf32, #tpu.memory_space<vmem>>, vector<1x4x1x1x128xf32>
    %32 = vector.shape_cast %31 : vector<1x4x1x1x128xf32> to vector<4x128xf32>
    %33 = tpu.concatenate %24, %26, %28, %30, %32 in 0 : vector<4x128xf32>, vector<4x128xf32>, vector<4x128xf32>, vector<4x128xf32>, vector<4x128xf32> -> vector<20x128xf32>
    %c0_52 = arith.constant 0 : index
    %c0_53 = arith.constant 0 : index
    %34 = vector.load %arg4[%c0_52, %c0_53] : memref<8x20xf32, #tpu.memory_space<vmem>>, vector<8x20xf32>
    %cst_54 = arith.constant dense<0.000000e+00> : vector<8x128xf32>
    %35 = tpu.matmul %34, %33, %cst_54 {dimension_numbers = #tpu.dot_dimension_numbers<[1], [0], [0], [1], [0, 0, 1, 1], [], []>} : vector<8x20xf32>, vector<20x128xf32>, vector<8x128xf32> -> vector<8x128xf32>
    %36 = vector.broadcast %5 : vector<8x1xf32> to vector<8x128xf32>
    %37 = arith.addf %35, %36 : vector<8x128xf32>
    %cst_55 = arith.constant 0.000000e+00 : f32
    %38 = vector.broadcast %cst_55 : f32 to vector<8x128xf32>
    %39 = arith.maximumf %37, %38 : vector<8x128xf32>
    %c0_56 = arith.constant 0 : index
    %c16_57 = arith.constant 16 : index
    %c1_58 = arith.constant 1 : index
    %c0_59 = arith.constant 0 : index
    %40 = vector.load %arg6[%c0_56, %c16_57, %c1_58, %c0_59] : memref<1x24x4x128xf32, #tpu.memory_space<vmem>>, vector<1x8x1x128xf32>
    %41 = vector.shape_cast %40 : vector<1x8x1x128xf32> to vector<8x128xf32>
    %42 = vector.shape_cast %39 : vector<8x128xf32> to vector<1x8x1x128xf32>
    tpu.vector_store %arg6[%c0_56, %c16_57, %c1_58, %c0_59], %42 {strides = array<i32>} : memref<1x24x4x128xf32, #tpu.memory_space<vmem>>, vector<1x8x1x128xf32>,
    %c0_60 = arith.constant 0 : index
    %c0_61 = arith.constant 0 : index
    %c1_62 = arith.constant 1 : index
    %c6_63 = arith.constant 6 : index
    %c0_64 = arith.constant 0 : index
    %43 = vector.load %arg3[%c0_60, %c0_61, %c1_62, %c6_63, %c0_64] : memref<1x4x4x8x128xf32, #tpu.memory_space<vmem>>, vector<1x4x1x1x128xf32>
    %44 = vector.shape_cast %43 : vector<1x4x1x1x128xf32> to vector<4x128xf32>
    %c0_65 = arith.constant 0 : index
    %c0_66 = arith.constant 0 : index
    %c1_67 = arith.constant 1 : index
    %c7_68 = arith.constant 7 : index
    %c0_69 = arith.constant 0 : index
    %45 = vector.load %arg3[%c0_65, %c0_66, %c1_67, %c7_68, %c0_69] : memref<1x4x4x8x128xf32, #tpu.memory_space<vmem>>, vector<1x4x1x1x128xf32>
    %46 = vector.shape_cast %45 : vector<1x4x1x1x128xf32> to vector<4x128xf32>
    %c0_70 = arith.constant 0 : index
    %c0_71 = arith.constant 0 : index
    %c2_72 = arith.constant 2 : index
    %c0_73 = arith.constant 0 : index
    %c0_74 = arith.constant 0 : index
    %47 = vector.load %arg3[%c0_70, %c0_71, %c2_72, %c0_73, %c0_74] : memref<1x4x4x8x128xf32, #tpu.memory_space<vmem>>, vector<1x4x1x1x128xf32>
    %48 = vector.shape_cast %47 : vector<1x4x1x1x128xf32> to vector<4x128xf32>
    %c0_75 = arith.constant 0 : index
    %c0_76 = arith.constant 0 : index
    %c2_77 = arith.constant 2 : index
    %c1_78 = arith.constant 1 : index
    %c0_79 = arith.constant 0 : index
    %49 = vector.load %arg3[%c0_75, %c0_76, %c2_77, %c1_78, %c0_79] : memref<1x4x4x8x128xf32, #tpu.memory_space<vmem>>, vector<1x4x1x1x128xf32>
    %50 = vector.shape_cast %49 : vector<1x4x1x1x128xf32> to vector<4x128xf32>
    %c0_80 = arith.constant 0 : index
    %c0_81 = arith.constant 0 : index
    %c2_82 = arith.constant 2 : index
    %c2_83 = arith.constant 2 : index
    %c0_84 = arith.constant 0 : index
    %51 = vector.load %arg3[%c0_80, %c0_81, %c2_82, %c2_83, %c0_84] : memref<1x4x4x8x128xf32, #tpu.memory_space<vmem>>, vector<1x4x1x1x128xf32>
    %52 = vector.shape_cast %51 : vector<1x4x1x1x128xf32> to vector<4x128xf32>
    %53 = tpu.concatenate %44, %46, %48, %50, %52 in 0 : vector<4x128xf32>, vector<4x128xf32>, vector<4x128xf32>, vector<4x128xf32>, vector<4x128xf32> -> vector<20x128xf32>
    %c0_85 = arith.constant 0 : index
    %c0_86 = arith.constant 0 : index
    %54 = vector.load %arg4[%c0_85, %c0_86] : memref<8x20xf32, #tpu.memory_space<vmem>>, vector<8x20xf32>
    %cst_87 = arith.constant dense<0.000000e+00> : vector<8x128xf32>
    %55 = tpu.matmul %54, %53, %cst_87 {dimension_numbers = #tpu.dot_dimension_numbers<[1], [0], [0], [1], [0, 0, 1, 1], [], []>} : vector<8x20xf32>, vector<20x128xf32>, vector<8x128xf32> -> vector<8x128xf32>
    %56 = vector.broadcast %5 : vector<8x1xf32> to vector<8x128xf32>
    %57 = arith.addf %55, %56 : vector<8x128xf32>
    %cst_88 = arith.constant 0.000000e+00 : f32
    %58 = vector.broadcast %cst_88 : f32 to vector<8x128xf32>
    %59 = arith.maximumf %57, %58 : vector<8x128xf32>
    %c0_89 = arith.constant 0 : index
    %c16_90 = arith.constant 16 : index
    %c2_91 = arith.constant 2 : index
    %c0_92 = arith.constant 0 : index
    %60 = vector.load %arg6[%c0_89, %c16_90, %c2_91, %c0_92] : memref<1x24x4x128xf32, #tpu.memory_space<vmem>>, vector<1x8x1x128xf32>
    %61 = vector.shape_cast %60 : vector<1x8x1x128xf32> to vector<8x128xf32>
    %62 = vector.shape_cast %59 : vector<8x128xf32> to vector<1x8x1x128xf32>
    tpu.vector_store %arg6[%c0_89, %c16_90, %c2_91, %c0_92], %62 {strides = array<i32>} : memref<1x24x4x128xf32, #tpu.memory_space<vmem>>, vector<1x8x1x128xf32>,
    %c0_93 = arith.constant 0 : index
    %c0_94 = arith.constant 0 : index
    %c2_95 = arith.constant 2 : index
    %c6_96 = arith.constant 6 : index
    %c0_97 = arith.constant 0 : index
    %63 = vector.load %arg3[%c0_93, %c0_94, %c2_95, %c6_96, %c0_97] : memref<1x4x4x8x128xf32, #tpu.memory_space<vmem>>, vector<1x4x1x1x128xf32>
    %64 = vector.shape_cast %63 : vector<1x4x1x1x128xf32> to vector<4x128xf32>
    %c0_98 = arith.constant 0 : index
    %c0_99 = arith.constant 0 : index
    %c2_100 = arith.constant 2 : index
    %c7_101 = arith.constant 7 : index
    %c0_102 = arith.constant 0 : index
    %65 = vector.load %arg3[%c0_98, %c0_99, %c2_100, %c7_101, %c0_102] : memref<1x4x4x8x128xf32, #tpu.memory_space<vmem>>, vector<1x4x1x1x128xf32>
    %66 = vector.shape_cast %65 : vector<1x4x1x1x128xf32> to vector<4x128xf32>
    %c0_103 = arith.constant 0 : index
    %c0_104 = arith.constant 0 : index
    %c3 = arith.constant 3 : index
    %c0_105 = arith.constant 0 : index
    %c0_106 = arith.constant 0 : index
    %67 = vector.load %arg3[%c0_103, %c0_104, %c3, %c0_105, %c0_106] : memref<1x4x4x8x128xf32, #tpu.memory_space<vmem>>, vector<1x4x1x1x128xf32>
    %68 = vector.shape_cast %67 : vector<1x4x1x1x128xf32> to vector<4x128xf32>
    %c0_107 = arith.constant 0 : index
    %c0_108 = arith.constant 0 : index
    %c3_109 = arith.constant 3 : index
    %c1_110 = arith.constant 1 : index
    %c0_111 = arith.constant 0 : index
    %69 = vector.load %arg3[%c0_107, %c0_108, %c3_109, %c1_110, %c0_111] : memref<1x4x4x8x128xf32, #tpu.memory_space<vmem>>, vector<1x4x1x1x128xf32>
    %70 = vector.shape_cast %69 : vector<1x4x1x1x128xf32> to vector<4x128xf32>
    %c0_112 = arith.constant 0 : index
    %c0_113 = arith.constant 0 : index
    %c3_114 = arith.constant 3 : index
    %c2_115 = arith.constant 2 : index
    %c0_116 = arith.constant 0 : index
    %71 = vector.load %arg3[%c0_112, %c0_113, %c3_114, %c2_115, %c0_116] : memref<1x4x4x8x128xf32, #tpu.memory_space<vmem>>, vector<1x4x1x1x128xf32>
    %72 = vector.shape_cast %71 : vector<1x4x1x1x128xf32> to vector<4x128xf32>
    %73 = tpu.concatenate %64, %66, %68, %70, %72 in 0 : vector<4x128xf32>, vector<4x128xf32>, vector<4x128xf32>, vector<4x128xf32>, vector<4x128xf32> -> vector<20x128xf32>
    %c0_117 = arith.constant 0 : index
    %c0_118 = arith.constant 0 : index
    %74 = vector.load %arg4[%c0_117, %c0_118] : memref<8x20xf32, #tpu.memory_space<vmem>>, vector<8x20xf32>
    %cst_119 = arith.constant dense<0.000000e+00> : vector<8x128xf32>
    %75 = tpu.matmul %74, %73, %cst_119 {dimension_numbers = #tpu.dot_dimension_numbers<[1], [0], [0], [1], [0, 0, 1, 1], [], []>} : vector<8x20xf32>, vector<20x128xf32>, vector<8x128xf32> -> vector<8x128xf32>
    %76 = vector.broadcast %5 : vector<8x1xf32> to vector<8x128xf32>
    %77 = arith.addf %75, %76 : vector<8x128xf32>
    %cst_120 = arith.constant 0.000000e+00 : f32
    %78 = vector.broadcast %cst_120 : f32 to vector<8x128xf32>
    %79 = arith.maximumf %77, %78 : vector<8x128xf32>
    %c0_121 = arith.constant 0 : index
    %c16_122 = arith.constant 16 : index
    %c3_123 = arith.constant 3 : index
    %c0_124 = arith.constant 0 : index
    %80 = vector.load %arg6[%c0_121, %c16_122, %c3_123, %c0_124] : memref<1x24x4x128xf32, #tpu.memory_space<vmem>>, vector<1x8x1x128xf32>
    %81 = vector.shape_cast %80 : vector<1x8x1x128xf32> to vector<8x128xf32>
    %82 = vector.shape_cast %79 : vector<8x128xf32> to vector<1x8x1x128xf32>
    tpu.vector_store %arg6[%c0_121, %c16_122, %c3_123, %c0_124], %82 {strides = array<i32>} : memref<1x24x4x128xf32, #tpu.memory_space<vmem>>, vector<1x8x1x128xf32>,
    return
  }
  func.func @transform_0(%arg0: i32, %arg1: i32) -> (i32, i32, i32, i32) {
    %c0_i32 = arith.constant 0 : i32
    %c0_i32_0 = arith.constant 0 : i32
    %c0_i32_1 = arith.constant 0 : i32
    return %arg0, %c0_i32, %c0_i32_0, %arg1 : i32, i32, i32, i32
  }
  func.func @transform_1(%arg0: i32, %arg1: i32) -> (i32, i32, i32, i32, i32) {
    %c0_i32 = arith.constant 0 : i32
    %c0_i32_0 = arith.constant 0 : i32
    %c0_i32_1 = arith.constant 0 : i32
    %c0_i32_2 = arith.constant 0 : i32
    return %arg0, %c0_i32, %c0_i32_0, %c0_i32_1, %arg1 : i32, i32, i32, i32, i32
  }
  func.func @transform_2(%arg0: i32, %arg1: i32) -> (i32, i32) {
    %c0_i32 = arith.constant 0 : i32
    %c0_i32_0 = arith.constant 0 : i32
    %c0_i32_1 = arith.constant 0 : i32
    return %c0_i32, %c0_i32_0 : i32, i32
  }
  func.func @transform_3(%arg0: i32, %arg1: i32) -> (i32, i32) {
    %c0_i32 = arith.constant 0 : i32
    %c0_i32_0 = arith.constant 0 : i32
    %c0_i32_1 = arith.constant 0 : i32
    return %c0_i32, %c0_i32_0 : i32, i32
  }
  func.func @transform_4(%arg0: i32, %arg1: i32) -> (i32, i32, i32, i32) {
    %c0_i32 = arith.constant 0 : i32
    %c0_i32_0 = arith.constant 0 : i32
    %c0_i32_1 = arith.constant 0 : i32
    return %arg0, %c0_i32, %c0_i32_0, %arg1 : i32, i32, i32, i32
  }
}

</mosaic_0001>

<bundles_post_ra>
// kernel: fuse_forward.1
= control target key start
LH: loop header
LB: loop body
LE: loop exit
PB: predicated region body
PF: predicated region fallthrough
CT: control target
= control target key end

     0   :  { %s1903_s15 = smov 0   ;;  %s1905_s16 = smov 0   ;;  %s2345_s0 = inlined_call_operand.vmem [shape: f32[2,16,4,256], index: 0, kind: input, shape index: {}]   ;;  %s2346_s1 = inlined_call_operand.vmem [shape: f32[2,4,4,8,256], index: 1, kind: input, shape index: {}]   ;;  %s2347_s2 = inlined_call_operand.vmem [shape: f32[8,20], index: 2, kind: input, shape index: {}]   ;;  %s2348_s3 = inlined_call_operand.vmem [shape: f32[8,1], index: 3, kind: input, shape index: {}]   ;;  %s2349_s4 = inlined_call_operand.vmem [shape: f32[2,24,4,256], index: 4, kind: output, shape index: {}]  }
   0x1   :  { %s1907_s17 = smov 0   ;;  %s1909_s18 = smov 0  }
   0x2   :  { %s1911_s19 = smov 0   ;;  %s1913_s20 = smov 0  }
   0x3   :  { %s1915_s21 = smov 0  }
   0x4 LB: > { %s23_s22 = sadd.s32 1, %s1863_s19  ;;  %s26_s23 = sadd.s32 1, %s1867_s20  ;;  %s1871_s21 = sphi %s1915_s21, %s14_s21   ;;  %s1867_s20 = sphi %s1913_s20, %s2357_s20   ;;  %s1863_s19 = sphi %s1911_s19, %s2356_s19   ;;  %s1859_s18 = sphi %s1909_s18, %s2355_s18   ;;  %s1855_s17 = sphi %s1907_s17, %s2354_s17   ;;  %s1851_s16 = sphi %s1905_s16, %s2353_s16   ;;  %s1847_s15 = sphi %s1903_s15, %s2352_s15  }
   0x5   : > { %p24_p0 = scmp.ge.s32.totalorder %s23_s22, 2  ;;  %s1565_s24 = sadd.s32 4294967295, %s1871_s21  }
   0x6   : > { %p42_p1 = scmp.ne.s32.totalorder %s1851_s16, %s1847_s15  ;;  %p43_p2 = scmp.eq.s32.totalorder %s1871_s21, 0 }
   0x7   : > { %s2359_s22 = smov (%p24_p0, %s23_s22), 0  ;;  %s2361_s23 = smov (!%p24_p0, %s26_s23), %s1867_s20 }
   0x8   : > { %p28_p3 = scmp.ge.s32.totalorder %s2361_s23, 2  ;;  %p144_p4 = scmp.eq.s32.totalorder %s1565_s24, 3 }
   0x9   : > { %s31_s25 = ssub.s32 %s1863_s19, %s2359_s22  ;;  %p1949_p5 = por %p43_p2, %p42_p1 }
   0xa   : > { %s2363_s23 = smov (%p28_p3, %s2361_s23), 0  ;;  %p1955_p6 = por %p144_p4, %p42_p1 }
   0xb   : > { %s30_s28 = ssub.s32 %s1867_s20, %s2363_s23  ;;  %s35_s30 = sadd.s32 1, %s1851_s16 }
   0xc   : > { %s32_s29 = sor.u32 %s31_s25, %s30_s28  ;;  %p1568_p8 = scmp.ge.s32.totalorder %s1871_s21, 4 }
   0xd   : > { %p33_p7 = scmp.eq.s32.totalorder %s32_s29, 0 }
   0xe   : > { %172 = sbr.rel (%p1568_p8) target bundleno = 51 (0x33), region = 24 }
   0xf   : > { %s1963_s5 = scalar_select %p33_p7, %s1851_s16, %s35_s30  }
  0x15   : > { %175 = sbr.rel (!%p1949_p5) target bundleno = 37 (0x25), region = 28  ;;  %s177_s6 = sand.u32 (%p1949_p5), 1, %s1851_s16  }
  0x16   : > { %s1570_s7 = sshll.u32 (%p1949_p5), %s1867_s20, 5  ;;  %s1569_s8 = sshll.u32 (%p1949_p5), %s177_s6, 6 }
  0x17   : > { %s181_s9 = sadd.s32 (%p1949_p5), %s1863_s19, %s1570_s7  ;;  %s179_s14 = scalar_lea.vmem (%p1949_p5), [#allocation2], %s1569_s8 }
  0x18   : > { %s1571_s10 = sshll.u32 (%p1949_p5), %s181_s9, 2 }
  0x19   : > { %s1974_s13 = scalar_lea.vmem (%p1949_p5), %s2345_s0, %s1571_s10 }
  0x1a   : > { %v199_v0 = vld [vmem:[%s1974_s13] sm:$0xf] (%p1949_p5)  ;;  %v201_v1 = vld [vmem:[%s1974_s13 + $0x8] sm:$0xf] (%p1949_p5)  ;;  %v203_v2 = vld [vmem:[%s1974_s13 + $0x10] sm:$0xf] (%p1949_p5) }
  0x1b   : > { %200 = vst [vmem:[%s179_s14] sm:$0xf] (%p1949_p5), %v199_v0  ;;  %202 = vst [vmem:[%s179_s14 + $0x4] sm:$0xf] (%p1949_p5), %v201_v1  ;;  %v205_v3 = vld [vmem:[%s1974_s13 + $0x18] sm:$0xf] (%p1949_p5) }
  0x1c   : > { %204 = vst [vmem:[%s179_s14 + $0x8] sm:$0xf] %v203_v2  ;;  %v207_v4 = vld [vmem:[%s1974_s13 + $0x20] sm:$0xf]  ;;  %v209_v5 = vld [vmem:[%s1974_s13 + $0x28] sm:$0xf] }
  0x1d   : > { %206 = vst [vmem:[%s179_s14 + $0xc] sm:$0xf] %v205_v3  ;;  %208 = vst [vmem:[%s179_s14 + $0x10] sm:$0xf] %v207_v4  ;;  %v211_v6 = vld [vmem:[%s1974_s13 + $0x30] sm:$0xf] }
  0x1e   : > { %210 = vst [vmem:[%s179_s14 + $0x14] sm:$0xf] %v209_v5  ;;  %v213_v7 = vld [vmem:[%s1974_s13 + $0x38] sm:$0xf]  ;;  %v215_v8 = vld [vmem:[%s1974_s13 + $0x40] sm:$0xf] }
  0x1f   : > { %212 = vst [vmem:[%s179_s14 + $0x18] sm:$0xf] %v211_v6  ;;  %214 = vst [vmem:[%s179_s14 + $0x1c] sm:$0xf] %v213_v7  ;;  %v217_v9 = vld [vmem:[%s1974_s13 + $0x48] sm:$0xf] }
  0x20   : > { %216 = vst [vmem:[%s179_s14 + $0x20] sm:$0xf] %v215_v8  ;;  %v219_v10 = vld [vmem:[%s1974_s13 + $0x50] sm:$0xf]  ;;  %v221_v11 = vld [vmem:[%s1974_s13 + $0x58] sm:$0xf] }
  0x21   : > { %218 = vst [vmem:[%s179_s14 + $0x24] sm:$0xf] %v217_v9  ;;  %220 = vst [vmem:[%s179_s14 + $0x28] sm:$0xf] %v219_v10  ;;  %v223_v12 = vld [vmem:[%s1974_s13 + $0x60] sm:$0xf] }
  0x22   : > { %222 = vst [vmem:[%s179_s14 + $0x2c] sm:$0xf] %v221_v11  ;;  %v225_v13 = vld [vmem:[%s1974_s13 + $0x68] sm:$0xf]  ;;  %v227_v14 = vld [vmem:[%s1974_s13 + $0x70] sm:$0xf] }
  0x23   : > { %224 = vst [vmem:[%s179_s14 + $0x30] sm:$0xf] %v223_v12  ;;  %226 = vst [vmem:[%s179_s14 + $0x34] sm:$0xf] %v225_v13  ;;  %v229_v15 = vld [vmem:[%s1974_s13 + $0x78] sm:$0xf] }
  0x24   : > { %228 = vst [vmem:[%s179_s14 + $0x38] sm:$0xf] %v227_v14  ;;  %230 = vst [vmem:[%s179_s14 + $0x3c] sm:$0xf] %v229_v15 }
  0x25 PF: > { %285 = sbr.rel (!%p1949_p5) target bundleno = 51 (0x33), region = 69  ;;  %s287_s24 = sand.u32 (%p1949_p5), 1, %s1851_s16  }
  0x26   : > { %s1573_s25 = sshll.u32 (%p1949_p5), %s1867_s20, 5  ;;  %s1572_s28 = sshll.u32 (%p1949_p5), %s287_s24, 7 }
  0x27   : > { %s291_s29 = sadd.s32 (%p1949_p5), %s1863_s19, %s1573_s25  ;;  %s289_s26 = scalar_lea.vmem (%p1949_p5), [#allocation3], %s1572_s28 }
  0x28   : > { %s1574_s30 = sshll.u32 (%p1949_p5), %s291_s29, 3 }
  0x29   : > { %s2000_s8 = scalar_lea.vmem (%p1949_p5), %s2346_s1, %s1574_s30 }
  0x2a   : > { %v351_v16 = vld [vmem:[%s2000_s8] sm:$0xff] (%p1949_p5)  ;;  %v353_v17 = vld [vmem:[%s2000_s8 + $0x10] sm:$0xff] (%p1949_p5) }
  0x2b   : > { %v355_v18 = vld [vmem:[%s2000_s8 + $0x20] sm:$0xff] (%p1949_p5)  ;;  %352 = vst [vmem:[%s289_s26] sm:$0xff] (%p1949_p5), %v351_v16  ;;  %354 = vst [vmem:[%s289_s26 + $0x8] sm:$0xff] (%p1949_p5), %v353_v17  ;;  %v357_v19 = vld [vmem:[%s2000_s8 + $0x30] sm:$0xff] (%p1949_p5) }
  0x2c   : > { %356 = vst [vmem:[%s289_s26 + $0x10] sm:$0xff] %v355_v18  ;;  %v359_v20 = vld [vmem:[%s2000_s8 + $0x40] sm:$0xff]  ;;  %v361_v21 = vld [vmem:[%s2000_s8 + $0x50] sm:$0xff]  ;;  %358 = vst [vmem:[%s289_s26 + $0x18] sm:$0xff] %v357_v19 }
  0x2d   : > { %360 = vst [vmem:[%s289_s26 + $0x20] sm:$0xff] %v359_v20  ;;  %362 = vst [vmem:[%s289_s26 + $0x28] sm:$0xff] %v361_v21  ;;  %v363_v22 = vld [vmem:[%s2000_s8 + $0x60] sm:$0xff]  ;;  %v365_v23 = vld [vmem:[%s2000_s8 + $0x70] sm:$0xff] }
  0x2e   : > { %v367_v24 = vld [vmem:[%s2000_s8 + $0x80] sm:$0xff]  ;;  %364 = vst [vmem:[%s289_s26 + $0x30] sm:$0xff] %v363_v22  ;;  %366 = vst [vmem:[%s289_s26 + $0x38] sm:$0xff] %v365_v23  ;;  %v369_v25 = vld [vmem:[%s2000_s8 + $0x90] sm:$0xff] }
  0x2f   : > { %368 = vst [vmem:[%s289_s26 + $0x40] sm:$0xff] %v367_v24  ;;  %v371_v26 = vld [vmem:[%s2000_s8 + $0xa0] sm:$0xff]  ;;  %v373_v27 = vld [vmem:[%s2000_s8 + $0xb0] sm:$0xff]  ;;  %370 = vst [vmem:[%s289_s26 + $0x48] sm:$0xff] %v369_v25 }
  0x30   : > { %372 = vst [vmem:[%s289_s26 + $0x50] sm:$0xff] %v371_v26  ;;  %374 = vst [vmem:[%s289_s26 + $0x58] sm:$0xff] %v373_v27  ;;  %v375_v28 = vld [vmem:[%s2000_s8 + $0xc0] sm:$0xff]  ;;  %v377_v29 = vld [vmem:[%s2000_s8 + $0xd0] sm:$0xff] }
  0x31   : > { %v379_v30 = vld [vmem:[%s2000_s8 + $0xe0] sm:$0xff]  ;;  %376 = vst [vmem:[%s289_s26 + $0x60] sm:$0xff] %v375_v28  ;;  %378 = vst [vmem:[%s289_s26 + $0x68] sm:$0xff] %v377_v29  ;;  %v381_v31 = vld [vmem:[%s2000_s8 + $0xf0] sm:$0xff] }
  0x32   : > { %380 = vst [vmem:[%s289_s26 + $0x70] sm:$0xff] %v379_v30  ;;  %382 = vst [vmem:[%s289_s26 + $0x78] sm:$0xff] %v381_v31 }
  0x33 PF: > { %p1575_p9 = scmp.ge.s32.totalorder %s1871_s21, 1  ;;  %p387_p10 = scmp.lt.s32.totalorder %s1871_s21, 5 }
  0x35   : > { %p388_p11 = pnand %p1575_p9, %p387_p10 }
  0x36   : > { %s394_s9 = sand.u32 (!%p388_p11), 1, %s1847_s15   ;;  %v1873_v32 = vmov (!%p388_p11), 0.0|0.0   ;;  %vm1874_vm0 = vmmov (!%p388_p11), 0   ;;  %v1875_v36 = vmov (!%p388_p11), 0.0   ;;  %vm479_vm1 = vcmask (!%p388_p11), 1041409   ;;  %v461_v58 = vld [vmem:[%s2348_s3] sm:$0xff] (!%p388_p11) }
  0x37   : > { %391 = sbr.rel (%p388_p11) target bundleno = 342 (0x156), region = 107  ;;  %1741 = vmatprep.subr.bf16.mxu0 (!%p388_p11), %v1873_v32  ;;  %1744 = vmatprep.subr.bf16.mxu1 (!%p388_p11), %v1873_v32  ;;  %s1576_s10 = sshll.u32 (!%p388_p11), %s394_s9, 6  ;;  %vm482_vm2 = vcmask (!%p388_p11), 1042434   ;;  %vm485_vm3 = vcmask (!%p388_p11), 1043459   ;;  %v1876_v40 = vmov (!%p388_p11), 0   ;;  %vm494_vm4 = vcmask (!%p388_p11), 1045509  }
  0x38   : > { %s1577_s11 = sshll.u32 (!%p388_p11), %s394_s9, 7  ;;  %s1753_s12 = smul.u32 (!%p388_p11), 96, %s394_s9  ;;  %1711 = vmatprep.mubr.msk.f32.mxu0 (!%p388_p11), %vm1874_vm0, %v1875_v36  ;;  %1720 = vmatprep.mubr.msk.f32.mxu1 (!%p388_p11), %vm1874_vm0, %v1875_v36  ;;  %vm497_vm5 = vcmask (!%p388_p11), 1046534   ;;  %vm500_vm6 = vcmask (!%p388_p11), 1047559   ;;  %vm513_vm7 = vcmask (!%p388_p11), 1043456   ;;  %vm521_vm8 = vcmask (!%p388_p11), 162816  }
  0x39   : > { %s396_s13 = scalar_lea.vmem (!%p388_p11), [#allocation2], %s1576_s10  ;;  %1816 = vset.pattern.permute.xlu0 (!%p388_p11), %v1876_v40  ;;  %s2027_s15 = scalar_lea.vmem (!%p388_p11), [#allocation3], %s1577_s11 }
  0x3a   : > { %v429_v33 = vld [vmem:[%s396_s13] sm:$0xff] (!%p388_p11)   ;;  %v431_v34 = vld [vmem:[%s396_s13 + $0x8] sm:$0xff] (!%p388_p11)   ;;  %v433_v35 = vld [vmem:[%s396_s13 + $0x10] sm:$0xff] (!%p388_p11)   ;;  %s2030_s14 = scalar_lea.vmem (!%p388_p11), [#allocation4], %s1753_s12  ;;  %518 = vperm.xlu0 (!%p388_p11), %1816, %v461_v58  }
  0x3b   : > { %v435_v37 = vld [vmem:[%s396_s13 + $0x18] sm:$0xff] (!%p388_p11)   ;;  %v437_v38 = vld [vmem:[%s396_s13 + $0x20] sm:$0xff] (!%p388_p11)   ;;  %v439_v39 = vld [vmem:[%s396_s13 + $0x28] sm:$0xff] (!%p388_p11)   ;;  %445 = vst [vmem:[%s2030_s14] sm:$0xff] (!%p388_p11), %v429_v33  }
  0x3c   : > { %v441_v41 = vld [vmem:[%s396_s13 + $0x30] sm:$0xff] (!%p388_p11)   ;;  %v443_v42 = vld [vmem:[%s396_s13 + $0x38] sm:$0xff] (!%p388_p11)   ;;  %v462_v43 = vld [vmem:[%s2027_s15] sm:$0x1] (!%p388_p11)  ;;  %447 = vst [vmem:[%s2030_s14 + $0x8] sm:$0xff] (!%p388_p11), %v431_v34  }
  0x3d   : > { %449 = vst [vmem:[%s2030_s14 + $0x10] sm:$0xff] (!%p388_p11), %v433_v35   ;;  %451 = vst [vmem:[%s2030_s14 + $0x18] sm:$0xff] (!%p388_p11), %v435_v37   ;;  %v463_v44 = vld [vmem:[%s2027_s15 + $0x20] sm:$0x1] (!%p388_p11)  ;;  %v466_v47 = vld [vmem:[%s2027_s15 + $0x1] sm:$0x1] (!%p388_p11) }
  0x3e   : > { %453 = vst [vmem:[%s2030_s14 + $0x20] sm:$0xff] %v437_v38   ;;  %455 = vst [vmem:[%s2030_s14 + $0x28] sm:$0xff] %v439_v39   ;;  %v464_v45 = vld [vmem:[%s2027_s15 + $0x40] sm:$0x1]  ;;  %v467_v48 = vld [vmem:[%s2027_s15 + $0x21] sm:$0x1] }
  0x3f   : > { %457 = vst [vmem:[%s2030_s14 + $0x30] sm:$0xff] %v441_v41   ;;  %459 = vst [vmem:[%s2030_s14 + $0x38] sm:$0xff] %v443_v42   ;;  %v465_v46 = vld [vmem:[%s2027_s15 + $0x60] sm:$0x1]  ;;  %v468_v49 = vld [vmem:[%s2027_s15 + $0x41] sm:$0x1] }
  0x40   : > { %v469_v50 = vld [vmem:[%s2027_s15 + $0x61] sm:$0x1]  ;;  %v478_v51 = vrot.slane %v463_v44, 7  ;;  %v481_v52 = vrot.slane %v464_v45, 6  ;;  %v484_v53 = vrot.slane %v465_v46, 5  ;;  %v492_v54 = vrot.slane %v466_v47, 4 }
  0x41   : > { %v493_v55 = vrot.slane %v467_v48, 3  ;;  %v496_v56 = vrot.slane %v468_v49, 2  ;;  %v499_v57 = vrot.slane %v469_v50, 1  ;;  %v666_v62 = vld [vmem:[%s2027_s15 + $0x26] sm:$0x1]  ;;  %s1754_s30 = smul.u32 (%p1955_p6), 48, %s1859_s18 }
  0x42   : > { %v480_v59 = vsel %vm479_vm1, %v478_v51, %v462_v43  ;;  %v667_v63 = vld [vmem:[%s2027_s15 + $0x46] sm:$0x1]  ;;  %v669_v4 = vld [vmem:[%s2027_s15 + $0x7] sm:$0x1]  ;;  %v1589_v9 = vld [vmem:[%s2027_s15 + $0x28] sm:$0x1] }
  0x43   : > { %v483_v60 = vsel %vm482_vm2, %v481_v52, %v480_v59  ;;  %v495_v61 = vsel %vm494_vm4, %v493_v55, %v492_v54  ;;  %v665_v2 = vld [vmem:[%s2027_s15 + $0x6] sm:$0x1]  ;;  %v670_v5 = vld [vmem:[%s2027_s15 + $0x27] sm:$0x1]  ;;  %v1588_v11 = vld [vmem:[%s2027_s15 + $0x8] sm:$0x1]  ;;  %s1339_s27 = sadd.s32 (%p1955_p6), %s1855_s17, %s1754_s30 }
  0x44   : > { %v486_v0 = vsel %vm485_vm3, %v484_v53, %v483_v60  ;;  %v498_v1 = vsel %vm497_vm5, %v496_v56, %v495_v61  ;;  %v668_v3 = vld [vmem:[%s2027_s15 + $0x66] sm:$0x1]  ;;  %v671_v7 = vld [vmem:[%s2027_s15 + $0x47] sm:$0x1]  ;;  %v1590_v12 = vld [vmem:[%s2027_s15 + $0x48] sm:$0x1] }
  0x45   : > { %v501_v6 = vsel %vm500_vm6, %v499_v57, %v498_v1  ;;  %v672_v8 = vld [vmem:[%s2027_s15 + $0x67] sm:$0x1]  ;;  %v1591_v13 = vld [vmem:[%s2027_s15 + $0x68] sm:$0x1]  ;;  %v1592_v14 = vld [vmem:[%s2027_s15 + $0x9] sm:$0x1] }
  0x46   : > { %v514_v10 = vsel %vm513_vm7, %v486_v0, %v501_v6  ;;  %v1593_v16 = vld [vmem:[%s2027_s15 + $0x29] sm:$0x1]  ;;  %v690_v17 = vrot.slane %v666_v62, 7  ;;  %v692_v18 = vrot.slane %v667_v63, 6  ;;  %v694_v19 = vrot.slane %v668_v3, 5  ;;  %v2099_v60 = vld [vmem:[%s2347_s2] sm:$0xff] }
  0x47   : > { %v1742_v15 = vpack.c.bf16 %v514_v10, %v1875_v36  ;;  %v1594_v20 = vld [vmem:[%s2027_s15 + $0x49] sm:$0x1]  ;;  %v701_v21 = vrot.slane %v669_v4, 4  ;;  %v702_v22 = vrot.slane %v670_v5, 3  ;;  %v704_v23 = vrot.slane %v671_v7, 2  ;;  %s1670_s6 = sshll.u32 (%p1955_p6), %s1339_s27, 2 }
  0x48   : > { %v706_v24 = vrot.slane %v672_v8, 1  ;;  %v1595_v25 = vld [vmem:[%s2027_s15 + $0x69] sm:$0x1]  ;;  %v691_v26 = vsel %vm479_vm1, %v690_v17, %v665_v2  ;;  %v713_v27 = vrot.slane %v1589_v9, 7  ;;  %v715_v28 = vrot.slane %v1590_v12, 6  ;;  %s2284_s26 = scalar_lea.vmem (%p1955_p6), %s2349_s4, %s1670_s6 }
  0x49   : > { %1743 = vmatpush3.bf16.msra.mxu0 %v1742_v15  ;;  %v717_v29 = vrot.slane %v1591_v13, 5  ;;  %v693_v30 = vsel %vm482_vm2, %v692_v18, %v691_v26  ;;  %v703_v31 = vsel %vm494_vm4, %v702_v22, %v701_v21  ;;  %v724_v33 = vrot.slane %v1592_v14, 4  ;;  %v470_v35 = vld [vmem:[%s2027_s15 + $0x2] sm:$0x1]  ;;  %v1597_v44 = vld [vmem:[%s2027_s15 + $0x2a] sm:$0x1] }
  0x4a   : > { %v725_v34 = vrot.slane %v1593_v16, 3  ;;  %1709 = vmatprep.subr.mxu0 %v1875_v36  ;;  %v471_v37 = vld [vmem:[%s2027_s15 + $0x22] sm:$0x1]  ;;  %v695_v39 = vsel %vm485_vm3, %v694_v19, %v693_v30  ;;  %v705_v40 = vsel %vm497_vm5, %v704_v23, %v703_v31  ;;  %v714_v41 = vsel %vm479_vm1, %v713_v27, %v1588_v11  ;;  %v1598_v49 = vld [vmem:[%s2027_s15 + $0x4a] sm:$0x1] }
  0x4b   : > { %v472_v38 = vld [vmem:[%s2027_s15 + $0x42] sm:$0x1]  ;;  %v727_v42 = vrot.slane %v1594_v20, 2  ;;  %v707_v45 = vsel %vm500_vm6, %v706_v24, %v705_v40  ;;  %v716_v46 = vsel %vm482_vm2, %v715_v28, %v714_v41  ;;  %v729_v48 = vrot.slane %v1595_v25, 1  ;;  %v1599_v50 = vld [vmem:[%s2027_s15 + $0x6a] sm:$0x1] }
  0x4c   : > { %v473_v43 = vld [vmem:[%s2027_s15 + $0x62] sm:$0x1]  ;;  %v726_v47 = vsel %vm494_vm4, %v725_v34, %v724_v33  ;;  %v718_v51 = vsel %vm485_vm3, %v717_v29, %v716_v46  ;;  %v742_v53 = vsel %vm513_vm7, %v695_v39, %v707_v45  ;;  %v507_v54 = vrot.slane %v471_v37, 7  ;;  %v1596_v55 = vld [vmem:[%s2027_s15 + $0xa] sm:$0x1] }
  0x4d   : > { %v728_v52 = vsel %vm497_vm5, %v727_v42, %v726_v47  ;;  %v509_v57 = vrot.slane %v472_v38, 6  ;;  %v511_v58 = vrot.slane %v473_v43, 5  ;;  %v736_v59 = vrot.slane %v1597_v44, 7  ;;  %v1611_v61 = vld [vmem:[%s2027_s15 + $0x2e] sm:$0x1] }
  0x4e   : > { %v730_v56 = vsel %vm500_vm6, %v729_v48, %v728_v52  ;;  %v508_v63 = vsel %vm479_vm1, %v507_v54, %v470_v35  ;;  %v738_v0 = vrot.slane %v1598_v49, 6  ;;  %v740_v1 = vrot.slane %v1599_v50, 5  ;;  %v1612_v2 = vld [vmem:[%s2027_s15 + $0x4e] sm:$0x1]  ;;  %v1614_v8 = vld [vmem:[%s2027_s15 + $0xf] sm:$0x1] }
  0x4f   : > { %v743_v62 = vsel %vm513_vm7, %v718_v51, %v730_v56  ;;  %v1613_v3 = vld [vmem:[%s2027_s15 + $0x6e] sm:$0x1]  ;;  %v510_v5 = vsel %vm482_vm2, %v509_v57, %v508_v63  ;;  %v737_v6 = vsel %vm479_vm1, %v736_v59, %v1596_v55  ;;  %v1615_v9 = vld [vmem:[%s2027_s15 + $0x2f] sm:$0x1]  ;;  %v1618_v14 = vld [vmem:[%s2027_s15 + $0x10] sm:$0x1] }
  0x50   : > { %v1745_v4 = vpack.c.bf16 %v743_v62, %v742_v53  ;;  %v1610_v7 = vld [vmem:[%s2027_s15 + $0xe] sm:$0x1]  ;;  %v1616_v10 = vld [vmem:[%s2027_s15 + $0x4f] sm:$0x1]  ;;  %v512_v11 = vsel %vm485_vm3, %v511_v58, %v510_v5  ;;  %v739_v12 = vsel %vm482_vm2, %v738_v0, %v737_v6  ;;  %v1619_v15 = vld [vmem:[%s2027_s15 + $0x30] sm:$0x1] }
  0x51   : > { %v1617_v13 = vld [vmem:[%s2027_s15 + $0x6f] sm:$0x1]  ;;  %1710 = vmatpush3.msk.msra.mxu0 %vm513_vm7, %v512_v11  ;;  %v741_v16 = vsel %vm485_vm3, %v740_v1, %v739_v12  ;;  %v1620_v17 = vld [vmem:[%s2027_s15 + $0x50] sm:$0x1]  ;;  %v1622_v19 = vld [vmem:[%s2027_s15 + $0x11] sm:$0x1] }
  0x52   : > { %1746 = vmatpush3.bf16.msra.mxu1 %v1745_v4  ;;  %v1621_v18 = vld [vmem:[%s2027_s15 + $0x70] sm:$0x1]  ;;  %1712 = vmatmul.mubr.msk.f32.vlgmr.msra.gmra.mrb[0].mxu0 %vm521_vm8, %v2099_v60  ;;  %v1623_v20 = vld [vmem:[%s2027_s15 + $0x31] sm:$0x1]  ;;  %v912_v21 = vrot.slane %v1611_v61, 7  ;;  %v914_v22 = vrot.slane %v1612_v2, 6 }
  0x53   : > { %1718 = vmatprep.subr.mxu1 %v1875_v36  ;;  %v916_v23 = vrot.slane %v1613_v3, 5  ;;  %v923_v24 = vrot.slane %v1614_v8, 4  ;;  %1747 = vmatprep.subr.bf16.mxu0 %v1873_v32  ;;  %v1624_v25 = vld [vmem:[%s2027_s15 + $0x51] sm:$0x1]  ;;  %v924_v26 = vrot.slane %v1615_v9, 3  ;;  %v926_v27 = vrot.slane %v1616_v10, 2 }
  0x54   : > { %v928_v28 = vrot.slane %v1617_v13, 1  ;;  %v935_v29 = vrot.slane %v1619_v15, 7  ;;  %1729 = vmatprep.mubr.msk.f32.mxu0 %vm1874_vm0, %v1875_v36  ;;  %v1625_v30 = vld [vmem:[%s2027_s15 + $0x71] sm:$0x1]  ;;  %v913_v31 = vsel %vm479_vm1, %v912_v21, %v1610_v7  ;;  %v937_v33 = vrot.slane %v1620_v17, 6 }
  0x55   : > { %v939_v34 = vrot.slane %v1621_v18, 5  ;;  %v946_v35 = vrot.slane %v1622_v19, 4  ;;  %v915_v37 = vsel %vm482_vm2, %v914_v22, %v913_v31  ;;  %v925_v38 = vsel %vm494_vm4, %v924_v26, %v923_v24  ;;  %v1641_v45 = vld [vmem:[%s2027_s15 + $0x36] sm:$0x1]  ;;  %v1644_v52 = vld [vmem:[%s2027_s15 + $0x17] sm:$0x1] }
  0x56   : > { %1719 = vmatpush3.msk.msra.mxu1 %vm513_vm7, %v741_v16  ;;  %v936_v39 = vsel %vm479_vm1, %v935_v29, %v1618_v14  ;;  %v947_v40 = vrot.slane %v1623_v20, 3  ;;  %v917_v41 = vsel %vm485_vm3, %v916_v23, %v915_v37  ;;  %v927_v42 = vsel %vm497_vm5, %v926_v27, %v925_v38  ;;  %v1642_v46 = vld [vmem:[%s2027_s15 + $0x56] sm:$0x1]  ;;  %v1645_v55 = vld [vmem:[%s2027_s15 + $0x37] sm:$0x1] }
  0x57   : > { %1721 = vmatmul.mubr.msk.f32.vlgmr.msra.gmra.mrb[0].mxu1 %vm521_vm8, %v2099_v60  ;;  %1750 = vmatprep.subr.bf16.mxu1 %v1873_v32  ;;  %v938_v43 = vsel %vm482_vm2, %v937_v33, %v936_v39  ;;  %v949_v44 = vrot.slane %v1624_v25, 2  ;;  %v929_v47 = vsel %vm500_vm6, %v928_v28, %v927_v42  ;;  %v951_v49 = vrot.slane %v1625_v30, 1  ;;  %v1640_v50 = vld [vmem:[%s2027_s15 + $0x16] sm:$0x1]  ;;  %v1646_v56 = vld [vmem:[%s2027_s15 + $0x57] sm:$0x1] }
  0x58   : > { %v940_v48 = vsel %vm485_vm3, %v939_v34, %v938_v43  ;;  %v948_v32 = vsel %vm494_vm4, %v947_v40, %v946_v35  ;;  %v1643_v51 = vld [vmem:[%s2027_s15 + $0x76] sm:$0x1]  ;;  %1738 = vmatprep.mubr.msk.f32.mxu1 %vm1874_vm0, %v1875_v36  ;;  %v964_v54 = vsel %vm513_vm7, %v917_v41, %v929_v47  ;;  %v1647_v57 = vld [vmem:[%s2027_s15 + $0x77] sm:$0x1]  ;;  %v1648_v59 = vld [vmem:[%s2027_s15 + $0x18] sm:$0x1] }
  0x59   : > { %v950_v53 = vsel %vm497_vm5, %v949_v44, %v948_v32  ;;  %v1649_v61 = vld [vmem:[%s2027_s15 + $0x38] sm:$0x1]  ;;  %v1652_v1 = vld [vmem:[%s2027_s15 + $0x19] sm:$0x1]  ;;  %v1134_v3 = vrot.slane %v1641_v45, 7  ;;  %v1136_v4 = vrot.slane %v1642_v46, 6 }
  0x5a   : > { %v952_v58 = vsel %vm500_vm6, %v951_v49, %v950_v53  ;;  %v1650_v62 = vld [vmem:[%s2027_s15 + $0x58] sm:$0x1]  ;;  %v1653_v2 = vld [vmem:[%s2027_s15 + $0x39] sm:$0x1]  ;;  %v1138_v7 = vrot.slane %v1643_v51, 5  ;;  %v1145_v8 = vrot.slane %v1644_v52, 4 }
  0x5b   : > { %v1651_v63 = vld [vmem:[%s2027_s15 + $0x78] sm:$0x1]  ;;  %v965_v0 = vsel %vm513_vm7, %v940_v48, %v952_v58  ;;  %v1654_v6 = vld [vmem:[%s2027_s15 + $0x59] sm:$0x1]  ;;  %v1146_v9 = vrot.slane %v1645_v55, 3  ;;  %v1135_v11 = vsel %vm479_vm1, %v1134_v3, %v1640_v50  ;;  %v1148_v12 = vrot.slane %v1646_v56, 2 }
  0x5c   : > { %v1748_v5 = vpack.c.bf16 %v965_v0, %v964_v54  ;;  %v1655_v10 = vld [vmem:[%s2027_s15 + $0x79] sm:$0x1]  ;;  %v1150_v13 = vrot.slane %v1647_v57, 1  ;;  %v1157_v14 = vrot.slane %v1649_v61, 7  ;;  %v1137_v15 = vsel %vm482_vm2, %v1136_v4, %v1135_v11  ;;  %v1627_v19 = vld [vmem:[%s2027_s15 + $0x32] sm:$0x1] }
  0x5d   : > { %v1147_v16 = vsel %vm494_vm4, %v1146_v9, %v1145_v8  ;;  %v1159_v17 = vrot.slane %v1650_v62, 6  ;;  %v1161_v18 = vrot.slane %v1651_v63, 5  ;;  %v1628_v20 = vld [vmem:[%s2027_s15 + $0x52] sm:$0x1]  ;;  %v1139_v21 = vsel %vm485_vm3, %v1138_v7, %v1137_v15  ;;  %v1657_v26 = vld [vmem:[%s2027_s15 + $0x3a] sm:$0x1] }
  0x5e   : > { %1749 = vmatpush3.bf16.msra.mxu0 %v1748_v5  ;;  %v1149_v22 = vsel %vm497_vm5, %v1148_v12, %v1147_v16  ;;  %v1158_v23 = vsel %vm479_vm1, %v1157_v14, %v1648_v59  ;;  %v1168_v24 = vrot.slane %v1652_v1, 4  ;;  %v1629_v25 = vld [vmem:[%s2027_s15 + $0x72] sm:$0x1]  ;;  %v1169_v29 = vrot.slane %v1653_v2, 3  ;;  %v1658_v33 = vld [vmem:[%s2027_s15 + $0x5a] sm:$0x1] }
  0x5f   : > { %1727 = vmatprep.subr.mxu0 %v1875_v36  ;;  %v1151_v27 = vsel %vm500_vm6, %v1150_v13, %v1149_v22  ;;  %v1160_v28 = vsel %vm482_vm2, %v1159_v17, %v1158_v23  ;;  %v1171_v30 = vrot.slane %v1654_v6, 2  ;;  %v1626_v31 = vld [vmem:[%s2027_s15 + $0x12] sm:$0x1]  ;;  %v1173_v35 = vrot.slane %v1655_v10, 1  ;;  %v1656_v38 = vld [vmem:[%s2027_s15 + $0x1a] sm:$0x1] }
  0x60   : > { %v1162_v34 = vsel %vm485_vm3, %v1161_v18, %v1160_v28  ;;  %v958_v37 = vrot.slane %v1627_v19, 7  ;;  %v1170_v39 = vsel %vm494_vm4, %v1169_v29, %v1168_v24  ;;  %v960_v40 = vrot.slane %v1628_v20, 6  ;;  %v1659_v42 = vld [vmem:[%s2027_s15 + $0x7a] sm:$0x1] }
  0x61   : > { %v962_v41 = vrot.slane %v1629_v25, 5  ;;  %v1180_v43 = vrot.slane %v1657_v26, 7  ;;  %v1172_v44 = vsel %vm497_vm5, %v1171_v30, %v1170_v39  ;;  %v1186_v45 = vsel %vm513_vm7, %v1139_v21, %v1151_v27 }
  0x62   : > { %v959_v46 = vsel %vm479_vm1, %v958_v37, %v1626_v31  ;;  %v1182_v47 = vrot.slane %v1658_v33, 6  ;;  %v1174_v48 = vsel %vm500_vm6, %v1173_v35, %v1172_v44  ;;  %v1184_v52 = vrot.slane %v1659_v42, 5 }
  0x63   : > { %v961_v32 = vsel %vm482_vm2, %v960_v40, %v959_v46  ;;  %v1181_v49 = vsel %vm479_vm1, %v1180_v43, %v1656_v38  ;;  %v1187_v50 = vsel %vm513_vm7, %v1162_v34, %v1174_v48  ;;  %v1877_v56 = vmov 1966171168  }
  0x64   : > { %v963_v51 = vsel %vm485_vm3, %v962_v41, %v961_v32  ;;  %v1751_v53 = vpack.c.bf16 %v1187_v50, %v1186_v45  ;;  %v1183_v54 = vsel %vm482_vm2, %v1182_v47, %v1181_v49  ;;  %v601_v57 = vunpack.c.l.s4 %v1877_v56 }
  0x65   : > { %1728 = vmatpush3.msk.msra.mxu0 %vm513_vm7, %v963_v51  ;;  %v1185_v55 = vsel %vm485_vm3, %v1184_v52, %v1183_v54  ;;  %v603_v58 = vlaneseq }
  0x66   : > { %1730 = vmatmul.mubr.msk.f32.vlgmr.msra.gmra.mrb[2].mxu0 %vm521_vm8, %v2099_v60  ;;  %1752 = vmatpush3.bf16.msra.mxu1 %v1751_v53  ;;  %v602_v59 = vunpack.c.0.s8 %v601_v57 }
  0x67   : > { %1736 = vmatprep.subr.mxu1 %v1875_v36  ;;  %v604_v61 = vshrl.u32 %v603_v58, 7 }
  0x69   : > { %v2205_v0 = vsub.s32 %v602_v59, %v604_v61 }
  0x6a   : > { %1737 = vmatpush3.msk.msra.mxu1 %vm513_vm7, %v1185_v55 }
  0x6b   : > { %1739 = vmatmul.mubr.msk.f32.vlgmr.msra.gmra.mrb[2].mxu1 %vm521_vm8, %v2099_v60 }
  0xb9   : > { %v2203_v62 = vpop.permute.xlu0 %518 }
 0x125   : > { %v593_v63 = vpop.f32.mrb[0].mxu0 }
 0x126   : > { %v594_v36 = vadd.f32 %v593_v63, %v2203_v62  ;;  %v1713_v1 = vpop.f32.mrb[1].mxu0 }
 0x128   : > { %v597_v2 = vmax.f32 %v594_v36, 0.0 }
 0x12a   : > { %v816_v3 = vpop.f32.mrb[0].mxu1  ;;  %v599_v4 = vcombine.high %v597_v2, %v597_v2  ;;  %v606_v60 = vrot.slane %v597_v2, %v2205_v0 }
 0x12b   : > { %v817_v5 = vadd.f32 %v816_v3, %v2203_v62  ;;  %v1722_v6 = vpop.f32.mrb[1].mxu1 }
 0x12c   : > { %v613_v7 = vrot.slane %v599_v4, %v2205_v0  ;;  %v614_v8 = vcombine.high %v606_v60, %v606_v60  ;;  %v622_v9 = vrot.slane %v606_v60, %v2205_v0  ;;  %1673 = vst.sshfl [vmem:[%s2030_s14 + $0x40] sm:$0x1 pattern:$0x73625140] %v606_v60  ;;  %v1359_v4 = vld [vmem:[%s2030_s14 + $0x4] sm:$0xf] (%p1955_p6) }
 0x12d   : > { %v820_v10 = vmax.f32 %v817_v5, 0.0  ;;  %v1361_v60 = vld [vmem:[%s2030_s14 + $0x8] sm:$0xf] (%p1955_p6)  ;;  %v1363_v5 = vld [vmem:[%s2030_s14 + $0xc] sm:$0xf] (%p1955_p6) }
 0x12e   : > { %v615_v11 = vcombine.high %v613_v7, %v613_v7  ;;  %v629_v12 = vrot.slane %v613_v7, %v2205_v0  ;;  %v636_v13 = vrot.slane %v614_v8, %v2205_v0  ;;  %v644_v14 = vcombine.high %v622_v9, %v622_v9  ;;  %1674 = vst.sshfl [vmem:[%s2030_s14 + $0x44] sm:$0x1 pattern:$0x73625140] %v614_v8  ;;  %v1365_v6 = vld [vmem:[%s2030_s14 + $0x10] sm:$0xf] (%p1955_p6) }
 0x12f   : > { %1675 = vst.sshfl [vmem:[%s2030_s14 + $0x50] sm:$0x1 pattern:$0x73625140] %v613_v7  ;;  %v822_v15 = vcombine.high %v820_v10, %v820_v10  ;;  %v829_v16 = vrot.slane %v820_v10, %v2205_v0  ;;  %v1367_v7 = vld [vmem:[%s2030_s14 + $0x14] sm:$0xf] (%p1955_p6) }
 0x130   : > { %v643_v17 = vrot.slane %v615_v11, %v2205_v0  ;;  %v645_v18 = vcombine.high %v629_v12, %v629_v12  ;;  %v646_v19 = vcombine.high %v636_v13, %v636_v13  ;;  %1582 = vst [vmem:[%s2030_s14 + $0x48] sm:$0x1] %v644_v14  ;;  %1676 = vst.sshfl [vmem:[%s2030_s14 + $0x54] sm:$0x1 pattern:$0x73625140] %v615_v11 }
 0x131   : > { %v836_v20 = vrot.slane %v822_v15, %v2205_v0  ;;  %v837_v21 = vcombine.high %v829_v16, %v829_v16  ;;  %v845_v22 = vrot.slane %v829_v16, %v2205_v0  ;;  %1677 = vst.sshfl [vmem:[%s2030_s14 + $0x41] sm:$0x1 pattern:$0x73625140] %v829_v16  ;;  %v1369_v8 = vld [vmem:[%s2030_s14 + $0x18] sm:$0xf] (%p1955_p6) }
 0x132   : > { %v647_v23 = vcombine.high %v643_v17, %v643_v17  ;;  %1583 = vst [vmem:[%s2030_s14 + $0x4c] sm:$0x1] %v646_v19  ;;  %1586 = vst [vmem:[%s2030_s14 + $0x58] sm:$0x1] %v645_v18  ;;  %v1371_v9 = vld [vmem:[%s2030_s14 + $0x1c] sm:$0xf] (%p1955_p6) }
 0x133   : > { %v838_v24 = vcombine.high %v836_v20, %v836_v20  ;;  %v852_v25 = vrot.slane %v836_v20, %v2205_v0  ;;  %v859_v26 = vrot.slane %v837_v21, %v2205_v0  ;;  %v867_v27 = vcombine.high %v845_v22, %v845_v22  ;;  %1678 = vst.sshfl [vmem:[%s2030_s14 + $0x45] sm:$0x1 pattern:$0x73625140] %v837_v21  ;;  %v1373_v10 = vld [vmem:[%s2030_s14 + $0x20] sm:$0xf] (%p1955_p6) }
 0x134   : > { %1679 = vst.sshfl [vmem:[%s2030_s14 + $0x51] sm:$0x1 pattern:$0x73625140] %v836_v20  ;;  %1587 = vst [vmem:[%s2030_s14 + $0x5c] sm:$0x1] %v647_v23 }
 0x135   : > { %v866_v28 = vrot.slane %v838_v24, %v2205_v0  ;;  %v868_v29 = vcombine.high %v852_v25, %v852_v25  ;;  %v869_v30 = vcombine.high %v859_v26, %v859_v26  ;;  %1604 = vst [vmem:[%s2030_s14 + $0x49] sm:$0x1] %v867_v27  ;;  %1680 = vst.sshfl [vmem:[%s2030_s14 + $0x55] sm:$0x1 pattern:$0x73625140] %v838_v24 }
 0x136   : > { %v1375_v11 = vld [vmem:[%s2030_s14 + $0x24] sm:$0xf] (%p1955_p6)  ;;  %v1377_v12 = vld [vmem:[%s2030_s14 + $0x28] sm:$0xf] (%p1955_p6)  ;;  %v1379_v13 = vld [vmem:[%s2030_s14 + $0x2c] sm:$0xf] (%p1955_p6) }
 0x137   : > { %v870_v31 = vcombine.high %v866_v28, %v866_v28  ;;  %1605 = vst [vmem:[%s2030_s14 + $0x4d] sm:$0x1] %v869_v30  ;;  %1608 = vst [vmem:[%s2030_s14 + $0x59] sm:$0x1] %v868_v29  ;;  %v1381_v14 = vld [vmem:[%s2030_s14 + $0x30] sm:$0xf] (%p1955_p6) }
 0x138   : > { %1360 = vst [vmem:[%s2284_s26 + $0x8] sm:$0xf] (%p1955_p6), %v1359_v4  ;;  %1362 = vst [vmem:[%s2284_s26 + $0x10] sm:$0xf] (%p1955_p6), %v1361_v60  ;;  %v1383_v15 = vld [vmem:[%s2030_s14 + $0x34] sm:$0xf] (%p1955_p6) }
 0x139   : > { %1609 = vst [vmem:[%s2030_s14 + $0x5d] sm:$0x1] %v870_v31  ;;  %v1038_v33 = vpop.f32.mrb[2].mxu0  ;;  %1364 = vst [vmem:[%s2284_s26 + $0x18] sm:$0xf] (%p1955_p6), %v1363_v5 }
 0x13a   : > { %v1039_v34 = vadd.f32 %v1038_v33, %v2203_v62  ;;  %v1731_v35 = vpop.f32.mrb[3].mxu0  ;;  %1366 = vst [vmem:[%s2284_s26 + $0x20] sm:$0xf] (%p1955_p6), %v1365_v6  ;;  %1368 = vst [vmem:[%s2284_s26 + $0x28] sm:$0xf] (%p1955_p6), %v1367_v7 }
 0x13b   : > { %1370 = vst [vmem:[%s2284_s26 + $0x30] sm:$0xf] (%p1955_p6), %v1369_v8  ;;  %1372 = vst [vmem:[%s2284_s26 + $0x38] sm:$0xf] (%p1955_p6), %v1371_v9  ;;  %v1385_v16 = vld [vmem:[%s2030_s14 + $0x38] sm:$0xf] (%p1955_p6) }
 0x13c   : > { %v1042_v37 = vmax.f32 %v1039_v34, 0.0  ;;  %1374 = vst [vmem:[%s2284_s26 + $0x40] sm:$0xf] (%p1955_p6), %v1373_v10  ;;  %1376 = vst [vmem:[%s2284_s26 + $0x48] sm:$0xf] (%p1955_p6), %v1375_v11 }
 0x13d   : > { %1378 = vst [vmem:[%s2284_s26 + $0x50] sm:$0xf] (%p1955_p6), %v1377_v12  ;;  %1380 = vst [vmem:[%s2284_s26 + $0x58] sm:$0xf] (%p1955_p6), %v1379_v13  ;;  %v1387_v17 = vld [vmem:[%s2030_s14 + $0x3c] sm:$0xf] (%p1955_p6) }
 0x13e   : > { %v1044_v38 = vcombine.high %v1042_v37, %v1042_v37  ;;  %v1051_v39 = vrot.slane %v1042_v37, %v2205_v0  ;;  %v1260_v40 = vpop.f32.mrb[2].mxu1  ;;  %1382 = vst [vmem:[%s2284_s26 + $0x60] sm:$0xf] (%p1955_p6), %v1381_v14  ;;  %1384 = vst [vmem:[%s2284_s26 + $0x68] sm:$0xf] (%p1955_p6), %v1383_v15 }
 0x13f   : > { %v1261_v44 = vadd.f32 %v1260_v40, %v2203_v62  ;;  %v1740_v45 = vpop.f32.mrb[3].mxu1  ;;  %1386 = vst [vmem:[%s2284_s26 + $0x70] sm:$0xf] (%p1955_p6), %v1385_v16  ;;  %1388 = vst [vmem:[%s2284_s26 + $0x78] sm:$0xf] (%p1955_p6), %v1387_v17 }
 0x140   : > { %v1058_v41 = vrot.slane %v1044_v38, %v2205_v0  ;;  %v1059_v42 = vcombine.high %v1051_v39, %v1051_v39  ;;  %v1067_v43 = vrot.slane %v1051_v39, %v2205_v0  ;;  %1681 = vst.sshfl [vmem:[%s2030_s14 + $0x42] sm:$0x1 pattern:$0x73625140] %v1051_v39 }
 0x141   : > { %v1264_v49 = vmax.f32 %v1261_v44, 0.0 }
 0x142   : > { %v1060_v46 = vcombine.high %v1058_v41, %v1058_v41  ;;  %v1074_v47 = vrot.slane %v1058_v41, %v2205_v0  ;;  %v1081_v48 = vrot.slane %v1059_v42, %v2205_v0  ;;  %v1089_v32 = vcombine.high %v1067_v43, %v1067_v43  ;;  %1682 = vst.sshfl [vmem:[%s2030_s14 + $0x46] sm:$0x1 pattern:$0x73625140] %v1059_v42 }
 0x143   : > { %1683 = vst.sshfl [vmem:[%s2030_s14 + $0x52] sm:$0x1 pattern:$0x73625140] %v1058_v41  ;;  %v1266_v53 = vcombine.high %v1264_v49, %v1264_v49  ;;  %v1273_v54 = vrot.slane %v1264_v49, %v2205_v0 }
 0x144   : > { %v1088_v50 = vrot.slane %v1060_v46, %v2205_v0  ;;  %v1090_v51 = vcombine.high %v1074_v47, %v1074_v47  ;;  %v1091_v52 = vcombine.high %v1081_v48, %v1081_v48  ;;  %1634 = vst [vmem:[%s2030_s14 + $0x4a] sm:$0x1] %v1089_v32  ;;  %1684 = vst.sshfl [vmem:[%s2030_s14 + $0x56] sm:$0x1 pattern:$0x73625140] %v1060_v46 }
 0x145   : > { %v1280_v56 = vrot.slane %v1266_v53, %v2205_v0  ;;  %v1281_v57 = vcombine.high %v1273_v54, %v1273_v54  ;;  %v1289_v58 = vrot.slane %v1273_v54, %v2205_v0  ;;  %1685 = vst.sshfl [vmem:[%s2030_s14 + $0x43] sm:$0x1 pattern:$0x73625140] %v1273_v54 }
 0x146   : > { %v1092_v55 = vcombine.high %v1088_v50, %v1088_v50  ;;  %1635 = vst [vmem:[%s2030_s14 + $0x4e] sm:$0x1] %v1091_v52  ;;  %1638 = vst [vmem:[%s2030_s14 + $0x5a] sm:$0x1] %v1090_v51 }
 0x147   : > { %v1282_v59 = vcombine.high %v1280_v56, %v1280_v56  ;;  %v1296_v61 = vrot.slane %v1280_v56, %v2205_v0  ;;  %v1303_v62 = vrot.slane %v1281_v57, %v2205_v0  ;;  %v1311_v63 = vcombine.high %v1289_v58, %v1289_v58  ;;  %1686 = vst.sshfl [vmem:[%s2030_s14 + $0x47] sm:$0x1 pattern:$0x73625140] %v1281_v57  ;;  %1337 = sbr.rel (!%p1955_p6) target bundleno = 342 (0x156), region = 119 }
 0x148   : > { %1639 = vst [vmem:[%s2030_s14 + $0x5e] sm:$0x1] %v1092_v55  ;;  %1687 = vst.sshfl [vmem:[%s2030_s14 + $0x53] sm:$0x1 pattern:$0x73625140] %v1280_v56 }
 0x149   : > { %v1310_v36 = vrot.slane %v1282_v59, %v2205_v0  ;;  %v1312_v1 = vcombine.high %v1296_v61, %v1296_v61  ;;  %v1313_v2 = vcombine.high %v1303_v62, %v1303_v62  ;;  %1664 = vst [vmem:[%s2030_s14 + $0x4b] sm:$0x1] %v1311_v63  ;;  %1688 = vst.sshfl [vmem:[%s2030_s14 + $0x57] sm:$0x1 pattern:$0x73625140] %v1282_v59 }
 0x14a   : > { %v1357_v0 = vld [vmem:[%s2030_s14] sm:$0xf] (%p1955_p6) }
 0x14b   : > { %v1314_v3 = vcombine.high %v1310_v36, %v1310_v36  ;;  %1665 = vst [vmem:[%s2030_s14 + $0x4f] sm:$0x1] %v1313_v2  ;;  %1668 = vst [vmem:[%s2030_s14 + $0x5b] sm:$0x1] %v1312_v1 }
 0x14c   : > { %1358 = vst [vmem:[%s2284_s26] sm:$0xf] (%p1955_p6), %v1357_v0  ;;  %v1389_v18 = vld [vmem:[%s2030_s14 + $0x40] sm:$0xf] (%p1955_p6) }
 0x14d   : > { %1669 = vst [vmem:[%s2030_s14 + $0x5f] sm:$0x1] %v1314_v3  ;;  %1390 = vst [vmem:[%s2284_s26 + $0x80] sm:$0xf] (%p1955_p6), %v1389_v18 }
 0x14e   : > { %v1391_v19 = vld [vmem:[%s2030_s14 + $0x44] sm:$0xf] }
 0x14f   : > { %1392 = vst [vmem:[%s2284_s26 + $0x88] sm:$0xf] %v1391_v19  ;;  %v1397_v22 = vld [vmem:[%s2030_s14 + $0x50] sm:$0xf] }
 0x150   : > { %v1393_v20 = vld [vmem:[%s2030_s14 + $0x48] sm:$0xf]  ;;  %v1399_v23 = vld [vmem:[%s2030_s14 + $0x54] sm:$0xf]  ;;  %1398 = vst [vmem:[%s2284_s26 + $0xa0] sm:$0xf] %v1397_v22 }
 0x151   : > { %1394 = vst [vmem:[%s2284_s26 + $0x90] sm:$0xf] %v1393_v20  ;;  %1400 = vst [vmem:[%s2284_s26 + $0xa8] sm:$0xf] %v1399_v23 }
 0x152   : > { %v1395_v21 = vld [vmem:[%s2030_s14 + $0x4c] sm:$0xf]  ;;  %v1401_v24 = vld [vmem:[%s2030_s14 + $0x58] sm:$0xf] }
 0x153   : > { %1396 = vst [vmem:[%s2284_s26 + $0x98] sm:$0xf] %v1395_v21  ;;  %1402 = vst [vmem:[%s2284_s26 + $0xb0] sm:$0xf] %v1401_v24 }
 0x154   : > { %v1403_v25 = vld [vmem:[%s2030_s14 + $0x5c] sm:$0xf] }
 0x155   : > { %1404 = vst [vmem:[%s2284_s26 + $0xb8] sm:$0xf] %v1403_v25 }
 0x156 PF: > { %s14_s21 = sadd.s32 1, %s1871_s21   ;;  %s2352_s15 = smov %s1851_s16 }
 0x157   : > { %p11_p12 = scmp.ge.s32.totalorder %s14_s21, 6   ;;  %s2353_s16 = smov %s1963_s5 }
 0x158   : > { %s2354_s17 = smov %s1863_s19  ;;  %s2355_s18 = smov %s1867_s20 }
 0x159   : > { %s2356_s19 = smov %s2359_s22  ;;  %s2357_s20 = smov %s2363_s23 }
 0x15a   :  { %13 = sbr.rel (!%p11_p12) target bundleno = 4 (0x4), region = 203 }

</bundles_post_ra>
